<compile_context>
chip_gen: v7x
topology: tpu7x:2x2x1
jax: 0.10.0
libtpu: 0.0.40
codegen_flags: <defaults>
</compile_context>

<pallas_src>
import functools

import numpy as np
import jax
import jax.numpy as jnp
from jax.experimental import pallas as pl
from jax.experimental.pallas import tpu as pltpu


# ---------------------------------------------------------------------------
# Deterministic mel filterbank construction (librosa.filters.mel, Slaney-style,
# norm="slaney"), implemented in numpy so no external data is needed.
# (Init-time only; not part of the forward pass.)
# ---------------------------------------------------------------------------
def _hz_to_mel(freqs):
    freqs = np.asarray(freqs, dtype=np.float64)
    f_min, f_sp = 0.0, 200.0 / 3
    mels = (freqs - f_min) / f_sp
    min_log_hz = 1000.0
    min_log_mel = (min_log_hz - f_min) / f_sp
    logstep = np.log(6.4) / 27.0
    log_region = freqs >= min_log_hz
    safe = np.maximum(freqs, 1e-10)
    mels = np.where(log_region, min_log_mel + np.log(safe / min_log_hz) / logstep, mels)
    return mels


def _mel_to_hz(mels):
    mels = np.asarray(mels, dtype=np.float64)
    f_min, f_sp = 0.0, 200.0 / 3
    freqs = f_min + f_sp * mels
    min_log_hz = 1000.0
    min_log_mel = (min_log_hz - f_min) / f_sp
    logstep = np.log(6.4) / 27.0
    log_region = mels >= min_log_mel
    freqs = np.where(log_region, min_log_hz * np.exp(logstep * (mels - min_log_mel)), freqs)
    return freqs


def make_mel_filterbank(sr, n_fft, n_mels, fmin, fmax):
    """Returns melW of shape (n_fft // 2 + 1, n_mels), float32 (transposed,
    as in the PyTorch module: librosa.filters.mel(...).T)."""
    n_freq = n_fft // 2 + 1
    fft_freqs = np.linspace(0.0, sr / 2.0, n_freq)
    mel_pts = np.linspace(_hz_to_mel(fmin), _hz_to_mel(fmax), n_mels + 2)
    mel_f = _mel_to_hz(mel_pts)

    fdiff = np.diff(mel_f)
    ramps = mel_f[:, None] - fft_freqs[None, :]

    weights = np.zeros((n_mels, n_freq), dtype=np.float64)
    for i in range(n_mels):
        lower = -ramps[i] / fdiff[i]
        upper = ramps[i + 2] / fdiff[i + 1]
        weights[i] = np.maximum(0.0, np.minimum(lower, upper))

    # Slaney normalization
    enorm = 2.0 / (mel_f[2 : n_mels + 2] - mel_f[:n_mels])
    weights *= enorm[:, None]
    return weights.T.astype(np.float32)  # (n_freq, n_mels)


def _round_up(n, k):
    return ((n + k - 1) // k) * k


# ---------------------------------------------------------------------------
# Per-generation tuning helpers (trace-time, static).
# ---------------------------------------------------------------------------
def _device_kind():
    try:
        return jax.devices()[0].device_kind.lower()
    except Exception:
        return ""


def _vmem_budget_bytes():
    # Tile-sizing VMEM budget (leaves headroom for the resident filterbank and
    # compiler temporaries): v5e scoped default is 16 MiB -> use ~12 MiB of
    # tiles; v6e / v7x default 32 MiB -> ~24 MiB (v7x physical is only 64 MiB,
    # so do not push further).
    k = _device_kind()
    if ("v6" in k) or ("v7" in k):
        return 24 << 20
    return 12 << 20


def _default_mxu_bf16():
    # v5e's MXU is bf16-only: an f32 x f32 dot lowers to multi-pass emulation
    # that can flip this memory-bound kernel to MXU-bound there.  Cast operands
    # to bf16 in-kernel on v5e (f32 accumulate); keep full f32 on v6e/v7x.
    k = _device_kind()
    return ("v5e" in k) or ("v5 lite" in k) or ("v5lite" in k)


# ---------------------------------------------------------------------------
# Pallas kernel: one row-tile -> mel matmul (MXU) + power_to_db (VPU/EUP)
# + per-tile masked max (XLU).  The global top_db clamp is NOT done here (it
# needs a global max); it runs as a tiny jit-fused epilogue in the wrapper so
# row tiles stay independent / parallel.
# ---------------------------------------------------------------------------
def _logmel_kernel(x_ref, w_ref, o_ref, tmax_ref, *, amin, db_offset, is_log,
                   valid_rows, tile_rows, mxu_bf16):
    x = x_ref[...]
    w = w_ref[...]
    if mxu_bf16:
        # In-kernel cast only (HBM/VMEM traffic stays f32); f32 accumulation.
        x = x.astype(jnp.bfloat16)
        w = w.astype(jnp.bfloat16)
    mel = jnp.dot(x, w, preferred_element_type=jnp.float32)

    if is_log:
        # 10*log10(v) == (10/ln 10) * ln(v); ln goes to the EUP (free slot).
        result = (np.float32(10.0 / np.log(10.0))
                  * jnp.log(jnp.maximum(mel, amin)) - db_offset)
    else:
        result = mel

    # Per-tile max for the global top_db clamp.  Rows of the partial boundary
    # tile beyond `valid_rows` contain undefined input data -> mask them.
    row = (pl.program_id(0) * tile_rows
           + jax.lax.broadcasted_iota(jnp.int32, result.shape, 0))
    tile_max = jnp.max(jnp.where(row < valid_rows, result, -jnp.inf))
    tmax_ref[...] = jnp.broadcast_to(tile_max, tmax_ref.shape)

    o_ref[...] = result.astype(o_ref.dtype)


def logmel_filterbank(
    x,
    melW,
    *,
    is_log=True,
    ref=1.0,
    amin=1e-10,
    top_db=80.0,
    tile_rows=None,     # optional cap, in ORIGINAL rows; None -> auto from VMEM budget
    mxu_bf16=None,      # None -> auto (bf16 operands only on v5e)
):
    """x: (batch, channels, time_steps, freq_bins) float32
       melW: (freq_bins, n_mels) float32
       returns: (batch, channels, time_steps, n_mels) float32

    Call under jax.jit so the slice / clamp / reshape epilogue fuses."""
    b, c, t, f = x.shape
    f2, m = melW.shape
    assert f == f2, "freq_bins mismatch between input and mel filterbank"
    rows = b * c * t

    if mxu_bf16 is None:
        mxu_bf16 = _default_mxu_bf16()

    # ----- output-column packing decision (all static Python) ---------------
    if m % 128 == 0:
        p = 1
    elif (128 % m == 0) and (rows % (128 // m) == 0):
        p = 128 // m
    else:
        p = 1

    w_f32 = melW.astype(jnp.float32)
    if p > 1:
        # Block-diagonal filterbank: (rows/p, p*f) @ (p*f, p*m) packs p original
        # rows per 128-lane output row.  Bit-identical memory to (rows, m).
        F, M, R = p * f, p * m, rows // p
        x_eff = x.reshape(R, F)                       # contiguous view; free
        w_eff = jnp.kron(jnp.eye(p, dtype=jnp.float32), w_f32)
        # TODO(synk): w_eff is a compile-time constant per filterbank config;
        # callers can precompute/donate it to skip the (tiny) per-call kron.
    else:
        F, R = f, rows
        M = _round_up(m, 128)                         # lane-dense fallback
        x_eff = x.reshape(R, F)
        w_eff = w_f32 if M == m else jnp.pad(w_f32, ((0, 0), (0, M - m)))

    # ----- row-tile size from per-generation VMEM byte budget ---------------
    budget = _vmem_budget_bytes()
    per_row_bytes = 4 * (2 * F + 3 * M)   # 2x-buffered input + 2x output + f32 result
    T = max(8, min(budget // per_row_bytes, 1 << 16))
    if tile_rows is not None:
        T = min(T, max(1, tile_rows // p))
    T = max(8, (T // 8) * 8)
    T = min(T, _round_up(R, 8))
    num_tiles = pl.cdiv(R, T)

    db_offset = np.float32(10.0 * np.log10(np.maximum(amin, ref)))
    kernel = functools.partial(
        _logmel_kernel,
        amin=np.float32(amin),
        db_offset=db_offset,
        is_log=is_log,
        valid_rows=R,
        tile_rows=T,
        mxu_bf16=mxu_bf16,
    )

    out, tile_max = pl.pallas_call(
        kernel,
        out_shape=(
            jax.ShapeDtypeStruct((R, M), jnp.float32),
            jax.ShapeDtypeStruct((num_tiles, 8, 128), jnp.float32),  # per-tile max
        ),
        grid=(num_tiles,),
        in_specs=[
            pl.BlockSpec((T, F), lambda i: (i, 0)),   # row tiles, pipelined
            pl.BlockSpec((F, M), lambda i: (0, 0)),   # filterbank: VMEM-resident
        ],
        out_specs=(
            pl.BlockSpec((T, M), lambda i: (i, 0)),   # lane-dense (M % 128 == 0)
            pl.BlockSpec((1, 8, 128), lambda i: (i, 0, 0)),
        ),
        compiler_params=pltpu.CompilerParams(
            dimension_semantics=("parallel",),        # shard across TCs on v7x
        ),
        cost_estimate=pl.CostEstimate(
            flops=2 * R * F * M,
            transcendentals=(R * M) if is_log else 0,
            bytes_accessed=R * F * 4 + R * M * 4 + F * M * 4 + num_tiles * 8 * 128 * 4,
        ),
    )(x_eff, w_eff)

    # ----- jit-fused epilogue: unpack / slice, global top_db clamp ----------
    logmel = out
    if p > 1:
        logmel = logmel.reshape(rows, m)              # same memory layout; free
    elif M != m:
        logmel = logmel[:, :m]

    if is_log and top_db is not None:
        if top_db < 0:
            raise ValueError("top_db must be non-negative")
        gmax = jnp.max(tile_max)                      # reduce num_tiles values only
        logmel = jnp.maximum(logmel, gmax - np.float32(top_db))

    return logmel.reshape(b, c, t, m)


# ---------------------------------------------------------------------------
# Reference in plain JAX (for correctness check)
# ---------------------------------------------------------------------------
def logmel_reference(x, melW, *, ref=1.0, amin=1e-10, top_db=80.0):
    mel = jnp.matmul(x, melW, precision=jax.lax.Precision.HIGHEST)
    log_spec = 10.0 * jnp.log10(jnp.maximum(mel, amin))
    log_spec = log_spec - 10.0 * np.log10(np.maximum(amin, ref))
    log_spec = jnp.maximum(log_spec, jnp.max(log_spec) - top_db)
    return log_spec


if __name__ == "__main__":
    # Small synthetic config (same structure as the module, scaled down):
    sr, n_fft, n_mels, fmin, fmax = 16000, 510, 64, 50, 7000
    n_freq = n_fft // 2 + 1  # 256

    melW = jnp.asarray(make_mel_filterbank(sr, n_fft, n_mels, fmin, fmax))

    # Input: nonnegative power spectrogram, (batch, channels, time, freq).
    # time=30 with tile_rows=16 gives a 4-step pipelined grid with a partial
    # boundary tile (exercises the per-tile-max row masking); production
    # default (tile_rows=None) auto-sizes the tile from the VMEM budget.
    key = jax.random.PRNGKey(0)
    x = jax.random.uniform(key, (2, 1, 30, n_freq), dtype=jnp.float32) * 3.0

    fn = jax.jit(functools.partial(
        logmel_filterbank, is_log=True, ref=1.0, amin=1e-10, top_db=80.0,
        tile_rows=16))
    out = jax.block_until_ready(fn(x, melW))

    ref_out = logmel_reference(x, melW)
    if _default_mxu_bf16():
        rtol, atol = 5e-3, 2e-1     # v5e path: bf16 MXU operands (~0.02-0.05 dB)
    else:
        rtol, atol = 2e-4, 2e-3     # f32 MXU path
    np.testing.assert_allclose(np.asarray(out), np.asarray(ref_out), rtol=rtol, atol=atol)

    assert out.shape == (2, 1, 30, n_mels)
    print("KERNEL_OK")
</pallas_src>

<mosaic_0001>
module attributes {stable_mosaic.version = 11 : i64} {
  func.func @_logmel_kernel(%arg0: i32, %arg1: memref<8x512xf32, #tpu.memory_space<vmem>>, %arg2: memref<512x128xf32, #tpu.memory_space<vmem>>, %arg3: memref<8x128xf32, #tpu.memory_space<vmem>>, %arg4: memref<1x8x128xf32, #tpu.memory_space<vmem>>) attributes {dimension_semantics = [#tpu.dimension_semantics<parallel>], iteration_bounds = array<i64: 4>, scalar_prefetch = 0 : i64, scratch_operands = 0 : i64, tpu.core_type = #tpu.core_type<tc>, window_params = [{transform_indices = @transform_0, window_bounds = array<i64: 8, 512>}, {pipeline_mode = #tpu.pipeline_mode<synchronous>, transform_indices = @transform_1, window_bounds = array<i64: 512, 128>}, {transform_indices = @transform_2, window_bounds = array<i64: 8, 128>}, {transform_indices = @transform_3, window_bounds = array<i64: 1, 8, 128>}]} {
    %c0 = arith.constant 0 : index
    %c0_0 = arith.constant 0 : index
    %0 = vector.load %arg1[%c0, %c0_0] : memref<8x512xf32, #tpu.memory_space<vmem>>, vector<8x512xf32>
    %c0_1 = arith.constant 0 : index
    %c0_2 = arith.constant 0 : index
    %1 = vector.load %arg2[%c0_1, %c0_2] : memref<512x128xf32, #tpu.memory_space<vmem>>, vector<512x128xf32>
    %cst = arith.constant dense<0.000000e+00> : vector<8x128xf32>
    %2 = tpu.matmul %0, %1, %cst {dimension_numbers = #tpu.dot_dimension_numbers<[1], [0], [0], [1], [0, 0, 1, 1], [], []>} : vector<8x512xf32>, vector<512x128xf32>, vector<8x128xf32> -> vector<8x128xf32>
    %cst_3 = arith.constant 1.000000e-10 : f32
    %3 = vector.broadcast %cst_3 : f32 to vector<8x128xf32>
    %4 = arith.maximumf %2, %3 : vector<8x128xf32>
    %5 = math.log %4 : vector<8x128xf32>
    %cst_4 = arith.constant 4.34294462 : f32
    %6 = vector.broadcast %cst_4 : f32 to vector<8x128xf32>
    %7 = arith.mulf %6, %5 : vector<8x128xf32>
    %cst_5 = arith.constant 0.000000e+00 : f32
    %8 = vector.broadcast %cst_5 : f32 to vector<8x128xf32>
    %9 = arith.subf %7, %8 : vector<8x128xf32>
    %c8_i32 = arith.constant 8 : i32
    %10 = arith.muli %arg0, %c8_i32 : i32
    %11 = tpu.iota {dimensions = array<i32: 0>} : vector<8x128xi32>
    %12 = vector.broadcast %10 : i32 to vector<8x128xi32>
    %13 = arith.addi %12, %11 : vector<8x128xi32>
    %c30_i32 = arith.constant 30 : i32
    %14 = vector.broadcast %c30_i32 : i32 to vector<8x128xi32>
    %15 = arith.cmpi slt, %13, %14 : vector<8x128xi32>
    %cst_6 = arith.constant 0xFF800000 : f32
    %16 = vector.broadcast %cst_6 : f32 to vector<8x128xf32>
    %17 = arith.select %15, %9, %16 : vector<8x128xi1>, vector<8x128xf32>
    %18 = vector.shape_cast %17 : vector<8x128xf32> to vector<1x8x128xf32>
    %cst_7 = arith.constant dense<0xFF800000> : vector<1xf32>
    %19 = vector.multi_reduction <maximumf>, %18, %cst_7 [1, 2] : vector<1x8x128xf32> to vector<1xf32>
    %20 = vector.shape_cast %19 : vector<1xf32> to vector<1x1x1xf32>
    %21 = vector.extract %20[0, 0, 0] : f32 from vector<1x1x1xf32>
    %22 = vector.broadcast %21 : f32 to vector<1x8x128xf32>
    %c0_8 = arith.constant 0 : index
    %c0_9 = arith.constant 0 : index
    %c0_10 = arith.constant 0 : index
    %23 = vector.load %arg4[%c0_8, %c0_9, %c0_10] : memref<1x8x128xf32, #tpu.memory_space<vmem>>, vector<1x8x128xf32>
    tpu.vector_store %arg4[%c0_8, %c0_9, %c0_10], %22 {strides = array<i32>} : memref<1x8x128xf32, #tpu.memory_space<vmem>>, vector<1x8x128xf32>,
    %c0_11 = arith.constant 0 : index
    %c0_12 = arith.constant 0 : index
    %24 = vector.load %arg3[%c0_11, %c0_12] : memref<8x128xf32, #tpu.memory_space<vmem>>, vector<8x128xf32>
    tpu.vector_store %arg3[%c0_11, %c0_12], %9 {strides = array<i32>} : memref<8x128xf32, #tpu.memory_space<vmem>>, vector<8x128xf32>,
    return
  }
  func.func @transform_0(%arg0: i32) -> (i32, i32) {
    %c0_i32 = arith.constant 0 : i32
    %c0_i32_0 = arith.constant 0 : i32
    return %arg0, %c0_i32 : i32, i32
  }
  func.func @transform_1(%arg0: i32) -> (i32, i32) {
    %c0_i32 = arith.constant 0 : i32
    %c0_i32_0 = arith.constant 0 : i32
    %c0_i32_1 = arith.constant 0 : i32
    return %c0_i32, %c0_i32_0 : i32, i32
  }
  func.func @transform_2(%arg0: i32) -> (i32, i32) {
    %c0_i32 = arith.constant 0 : i32
    %c0_i32_0 = arith.constant 0 : i32
    return %arg0, %c0_i32 : i32, i32
  }
  func.func @transform_3(%arg0: i32) -> (i32, i32, i32) {
    %c0_i32 = arith.constant 0 : i32
    %c0_i32_0 = arith.constant 0 : i32
    %c0_i32_1 = arith.constant 0 : i32
    return %arg0, %c0_i32, %c0_i32_0 : i32, i32, i32
  }
}

</mosaic_0001>

<bundles_post_ra>
// kernel: logmel_filterbank.1
= control target key start
LH: loop header
LB: loop body
LE: loop exit
PB: predicated region body
PF: predicated region fallthrough
CT: control target
= control target key end

     0   :  { %s682_s12 = smov 0   ;;  %s911_s0 = inlined_call_operand.vmem [shape: f32[30,512], index: 0, kind: input, shape index: {}]   ;;  %s912_s1 = inlined_call_operand.vmem [shape: f32[512,128], index: 1, kind: input, shape index: {}]   ;;  %s913_s2 = inlined_call_operand.vmem [shape: f32[30,128], index: 2, kind: output, shape index: {0}]   ;;  %s914_s3 = inlined_call_operand.vmem [shape: f32[4,8,128], index: 3, kind: output, shape index: {1}]  }
   0x1 LB: > { %s688_s13 = sadd.s32 4294967295, %s660_s12   ;;  %p499_p0 = scmp.ge.s32.totalorder %s660_s12, 1  ;;  %s660_s12 = sphi %s682_s12, %s14_s12  }
   0x2   : > { %p140_p1 = scmp.lt.s32.totalorder %s660_s12, 5 }
   0x4   : > { %p141_p2 = pnand %p499_p0, %p140_p1 }
   0x5   : > { %v200_v0 = vld [vmem:[%s912_s1 + $0x80] sm:$0xff] (!%p141_p2)  ;;  %v201_v1 = vld [vmem:[%s912_s1 + $0x88] sm:$0xff] (!%p141_p2)  ;;  %v202_v11 = vld [vmem:[%s912_s1 + $0x90] sm:$0xff] (!%p141_p2)  ;;  %p167_p3 = scmp.lt.s32.totalorder (!%p141_p2), %s688_s13, 3  ;;  %s504_s25 = sshll.u32 (!%p141_p2), %s688_s13, 3 }
   0x6   : > { %144 = sbr.rel (%p141_p2) target bundleno = 483 (0x1e3), region = 28  ;;  %v232_v2 = vld [vmem:[%s912_s1 + $0x180] sm:$0xff] (!%p141_p2)  ;;  %v578_v3 = vpack.c.bf16 (!%p141_p2), %v201_v1, %v200_v0  ;;  %v233_v4 = vld [vmem:[%s912_s1 + $0x188] sm:$0xff] (!%p141_p2)  ;;  %v203_v13 = vld [vmem:[%s912_s1 + $0x98] sm:$0xff] (!%p141_p2) }
   0x7   : > { %v184_v5 = vld [vmem:[%s912_s1] sm:$0xff] (!%p141_p2)  ;;  %v185_v6 = vld [vmem:[%s912_s1 + $0x8] sm:$0xff] (!%p141_p2)  ;;  %v610_v7 = vpack.c.bf16 (!%p141_p2), %v233_v4, %v232_v2  ;;  %v234_v14 = vld [vmem:[%s912_s1 + $0x190] sm:$0xff] (!%p141_p2)  ;;  %v582_v16 = vpack.c.bf16 (!%p141_p2), %v203_v13, %v202_v11 }
   0x8   : > { %v580_v8 = vpack.c.bf16 (!%p141_p2), %v185_v6, %v184_v5  ;;  %v216_v9 = vld [vmem:[%s912_s1 + $0x100] sm:$0xff] (!%p141_p2)  ;;  %v217_v10 = vld [vmem:[%s912_s1 + $0x108] sm:$0xff] (!%p141_p2)  ;;  %579 = vmatprep.subr.bf16.mxu0 (!%p141_p2), %v578_v3  ;;  %v235_v15 = vld [vmem:[%s912_s1 + $0x198] sm:$0xff] (!%p141_p2) }
   0x9   : > { %v612_v12 = vpack.c.bf16 (!%p141_p2), %v217_v10, %v216_v9  ;;  %611 = vmatprep.subr.bf16.mxu1 (!%p141_p2), %v610_v7  ;;  %v614_v17 = vpack.c.bf16 (!%p141_p2), %v235_v15, %v234_v14  ;;  %v186_v18 = vld [vmem:[%s912_s1 + $0x10] sm:$0xff] (!%p141_p2)  ;;  %v187_v19 = vld [vmem:[%s912_s1 + $0x18] sm:$0xff] (!%p141_p2)  ;;  %v204_v23 = vld [vmem:[%s912_s1 + $0xa0] sm:$0xff] (!%p141_p2) }
   0xa   : > { %581 = vmatpush3.bf16.msra.mxu0 (!%p141_p2), %v580_v8  ;;  %v218_v20 = vld [vmem:[%s912_s1 + $0x110] sm:$0xff] (!%p141_p2)  ;;  %v584_v21 = vpack.c.bf16 (!%p141_p2), %v187_v19, %v186_v18  ;;  %v219_v22 = vld [vmem:[%s912_s1 + $0x118] sm:$0xff] (!%p141_p2)  ;;  %v205_v24 = vld [vmem:[%s912_s1 + $0xa8] sm:$0xff] (!%p141_p2) }
   0xb   : > { %613 = vmatpush3.bf16.msra.mxu1 (!%p141_p2), %v612_v12  ;;  %583 = vmatprep.subr.bf16.mxu0 (!%p141_p2), %v582_v16  ;;  %v616_v25 = vpack.c.bf16 (!%p141_p2), %v219_v22, %v218_v20  ;;  %v586_v26 = vpack.c.bf16 (!%p141_p2), %v205_v24, %v204_v23  ;;  %v236_v27 = vld [vmem:[%s912_s1 + $0x1a0] sm:$0xff] (!%p141_p2)  ;;  %v237_v28 = vld [vmem:[%s912_s1 + $0x1a8] sm:$0xff] (!%p141_p2)  ;;  %v206_v35 = vld [vmem:[%s912_s1 + $0xb0] sm:$0xff] (!%p141_p2) }
   0xc   : > { %615 = vmatprep.subr.bf16.mxu1 (!%p141_p2), %v614_v17  ;;  %v188_v29 = vld [vmem:[%s912_s1 + $0x20] sm:$0xff] (!%p141_p2)  ;;  %v618_v30 = vpack.c.bf16 (!%p141_p2), %v237_v28, %v236_v27  ;;  %v189_v31 = vld [vmem:[%s912_s1 + $0x28] sm:$0xff] (!%p141_p2)  ;;  %v207_v36 = vld [vmem:[%s912_s1 + $0xb8] sm:$0xff] (!%p141_p2) }
   0xd   : > { %v220_v32 = vld [vmem:[%s912_s1 + $0x120] sm:$0xff]  ;;  %v221_v33 = vld [vmem:[%s912_s1 + $0x128] sm:$0xff]  ;;  %v588_v34 = vpack.c.bf16 %v189_v31, %v188_v29  ;;  %v238_v37 = vld [vmem:[%s912_s1 + $0x1b0] sm:$0xff]  ;;  %v590_v39 = vpack.c.bf16 %v207_v36, %v206_v35  ;;  %s804_s9 = scalar_select %p167_p3, %s688_s13, 3 }
   0xe   : > { %585 = vmatpush3.bf16.msra.mxu0 %v584_v21  ;;  %v620_v38 = vpack.c.bf16 %v221_v33, %v220_v32  ;;  %v239_v40 = vld [vmem:[%s912_s1 + $0x1b8] sm:$0xff]  ;;  %v190_v41 = vld [vmem:[%s912_s1 + $0x30] sm:$0xff]  ;;  %v208_v46 = vld [vmem:[%s912_s1 + $0xc0] sm:$0xff] }
   0xf   : > { %617 = vmatpush3.bf16.msra.mxu1 %v616_v25  ;;  %587 = vmatprep.subr.bf16.mxu0 %v586_v26  ;;  %v191_v42 = vld [vmem:[%s912_s1 + $0x38] sm:$0xff]  ;;  %v622_v43 = vpack.c.bf16 %v239_v40, %v238_v37  ;;  %v222_v44 = vld [vmem:[%s912_s1 + $0x130] sm:$0xff]  ;;  %v209_v47 = vld [vmem:[%s912_s1 + $0xc8] sm:$0xff]  ;;  %s507_s28 = sshll.u32 %s804_s9, 5  ;;  %s502_s26 = sshll.u32 %s804_s9, 3 }
  0x10   : > { %619 = vmatprep.subr.bf16.mxu1 %v618_v30  ;;  %v223_v45 = vld [vmem:[%s912_s1 + $0x138] sm:$0xff]  ;;  %v240_v48 = vld [vmem:[%s912_s1 + $0x1c0] sm:$0xff]  ;;  %v241_v49 = vld [vmem:[%s912_s1 + $0x1c8] sm:$0xff]  ;;  %v592_v50 = vpack.c.bf16 %v191_v42, %v190_v41  ;;  %v594_v52 = vpack.c.bf16 %v209_v47, %v208_v46  ;;  %s852_s19 = scalar_lea.vmem %s911_s0, %s507_s28  ;;  %v395_v46 = vstv %s504_s25  ;;  %s175_s28 = scalar_lea.vmem %s913_s2, %s502_s26 }
  0x11   : > { %v624_v51 = vpack.c.bf16 %v223_v45, %v222_v44  ;;  %v192_v53 = vld [vmem:[%s912_s1 + $0x40] sm:$0xff]  ;;  %v193_v54 = vld [vmem:[%s912_s1 + $0x48] sm:$0xff]  ;;  %v626_v56 = vpack.c.bf16 %v241_v49, %v240_v48  ;;  %v210_v58 = vld [vmem:[%s912_s1 + $0xd0] sm:$0xff]  ;;  %v393_v44 = vlaneseq  ;;  %s179_s29 = scalar_lea.vmem %s914_s3, %s502_s26 }
  0x12   : > { %589 = vmatpush3.bf16.msra.mxu0 %v588_v34  ;;  %v224_v55 = vld [vmem:[%s912_s1 + $0x140] sm:$0xff]  ;;  %v225_v57 = vld [vmem:[%s912_s1 + $0x148] sm:$0xff]  ;;  %v211_v59 = vld [vmem:[%s912_s1 + $0xd8] sm:$0xff]  ;;  %v596_v62 = vpack.c.bf16 %v193_v54, %v192_v53 }
  0x13   : > { %621 = vmatpush3.bf16.msra.mxu1 %v620_v38  ;;  %591 = vmatprep.subr.bf16.mxu0 %v590_v39  ;;  %v242_v60 = vld [vmem:[%s912_s1 + $0x1d0] sm:$0xff]  ;;  %v243_v61 = vld [vmem:[%s912_s1 + $0x1d8] sm:$0xff]  ;;  %v628_v63 = vpack.c.bf16 %v225_v57, %v224_v55  ;;  %v598_v0 = vpack.c.bf16 %v211_v59, %v210_v58  ;;  %v212_v6 = vld [vmem:[%s912_s1 + $0xe0] sm:$0xff]  ;;  %v394_v45 = vshrl.u32 %v393_v44, 7 }
  0x14   : > { %623 = vmatprep.subr.bf16.mxu1 %v622_v43  ;;  %v194_v1 = vld [vmem:[%s912_s1 + $0x50] sm:$0xff]  ;;  %v195_v2 = vld [vmem:[%s912_s1 + $0x58] sm:$0xff]  ;;  %v630_v4 = vpack.c.bf16 %v243_v61, %v242_v60  ;;  %v213_v7 = vld [vmem:[%s912_s1 + $0xe8] sm:$0xff] }
  0x15   : > { %v226_v3 = vld [vmem:[%s912_s1 + $0x150] sm:$0xff]  ;;  %v227_v5 = vld [vmem:[%s912_s1 + $0x158] sm:$0xff]  ;;  %v244_v8 = vld [vmem:[%s912_s1 + $0x1e0] sm:$0xff]  ;;  %v600_v10 = vpack.c.bf16 %v195_v2, %v194_v1  ;;  %v602_v14 = vpack.c.bf16 %v213_v7, %v212_v6  ;;  %v396_v47 = vadd.s32 %v395_v46, %v394_v45 }
  0x16   : > { %593 = vmatpush3.bf16.msra.mxu0 %v592_v50  ;;  %v245_v9 = vld [vmem:[%s912_s1 + $0x1e8] sm:$0xff]  ;;  %v196_v11 = vld [vmem:[%s912_s1 + $0x60] sm:$0xff]  ;;  %v632_v13 = vpack.c.bf16 %v227_v5, %v226_v3  ;;  %v183_v17 = vld [vmem:[%s852_s19 + $0x18] sm:$0xff] }
  0x17   : > { %625 = vmatpush3.bf16.msra.mxu1 %v624_v51  ;;  %595 = vmatprep.subr.bf16.mxu0 %v594_v52  ;;  %v197_v12 = vld [vmem:[%s912_s1 + $0x68] sm:$0xff]  ;;  %v228_v15 = vld [vmem:[%s912_s1 + $0x160] sm:$0xff]  ;;  %v634_v18 = vpack.c.bf16 %v245_v9, %v244_v8  ;;  %v214_v20 = vld [vmem:[%s912_s1 + $0xf0] sm:$0xff]  ;;  %vm397_vm0 = vcmp.lt.s32.totalorder %v396_v47, 30 }
  0x18   : > { %627 = vmatprep.subr.bf16.mxu1 %v626_v56  ;;  %v181_v16 = vld [vmem:[%s852_s19 + $0x8] sm:$0xff]  ;;  %v215_v21 = vld [vmem:[%s912_s1 + $0xf8] sm:$0xff]  ;;  %v246_v22 = vld [vmem:[%s912_s1 + $0x1f0] sm:$0xff]  ;;  %382 = vmatprep.mubr.f32.mxu1 %v183_v17  ;;  %v604_v24 = vpack.c.bf16 %v197_v12, %v196_v11 }
  0x19   : > { %v229_v19 = vld [vmem:[%s912_s1 + $0x168] sm:$0xff]  ;;  %312 = vmatprep.mubr.f32.mxu0 %v181_v16  ;;  %v247_v23 = vld [vmem:[%s912_s1 + $0x1f8] sm:$0xff]  ;;  %v606_v26 = vpack.c.bf16 %v215_v21, %v214_v20  ;;  %v198_v27 = vld [vmem:[%s912_s1 + $0x70] sm:$0xff] }
  0x1a   : > { %597 = vmatpush3.bf16.msra.mxu0 %v596_v62  ;;  %v636_v25 = vpack.c.bf16 %v229_v19, %v228_v15  ;;  %v199_v28 = vld [vmem:[%s912_s1 + $0x78] sm:$0xff]  ;;  %v638_v29 = vpack.c.bf16 %v247_v23, %v246_v22  ;;  %v230_v30 = vld [vmem:[%s912_s1 + $0x170] sm:$0xff]  ;;  %v180_v34 = vld [vmem:[%s852_s19] sm:$0xff] }
  0x1b   : > { %629 = vmatpush3.bf16.msra.mxu1 %v628_v63  ;;  %599 = vmatprep.subr.bf16.mxu0 %v598_v0  ;;  %v231_v31 = vld [vmem:[%s912_s1 + $0x178] sm:$0xff]  ;;  %v608_v32 = vpack.c.bf16 %v199_v28, %v198_v27  ;;  %v182_v35 = vld [vmem:[%s852_s19 + $0x10] sm:$0xff] }
  0x1c   : > { %631 = vmatprep.subr.bf16.mxu1 %v630_v4  ;;  %v640_v33 = vpack.c.bf16 %v231_v31, %v230_v30 }
  0x1e   : > { %601 = vmatpush3.bf16.msra.mxu0 %v600_v10 }
  0x1f   : > { %633 = vmatpush3.bf16.msra.mxu1 %v632_v13  ;;  %603 = vmatprep.subr.bf16.mxu0 %v602_v14 }
  0x20   : > { %635 = vmatprep.subr.bf16.mxu1 %v634_v18 }
  0x22   : > { %605 = vmatpush3.bf16.msra.mxu0 %v604_v24 }
  0x23   : > { %637 = vmatpush3.bf16.msra.mxu1 %v636_v25  ;;  %607 = vmatprep.subr.bf16.mxu0 %v606_v26 }
  0x24   : > { %639 = vmatprep.subr.bf16.mxu1 %v638_v29 }
  0x26   : > { %609 = vmatpush3.bf16.msra.mxu0 %v608_v32 }
  0x27   : > { %641 = vmatpush3.bf16.msra.mxu1 %v640_v33 }
  0x29   : > { %313 = vmatmul.mubr.f32.vlgmr.msra.gmra.mrb[0].mxu0 %v180_v34 }
  0x2a   : > { %383 = vmatmul.mubr.f32.vlgmr.msra.gmra.mrb[0].mxu1 %v182_v35 }
  0xfc   : > { %v540_v36 = vpop.f32.mrb[0].mxu0 }
  0xfd   : > { %v575_v37 = vpop.f32.mrb[0].mxu1  ;;  %v541_v38 = vpop.f32.mrb[1].mxu0 }
  0xfe   : > { %v542_v39 = vadd.f32 %v541_v38, %v540_v36  ;;  %v576_v40 = vpop.f32.mrb[1].mxu1 }
  0xff   : > { %v577_v41 = vadd.f32 %v576_v40, %v575_v37 }
 0x101   : > { %v385_v42 = vadd.f32 %v577_v41, %v542_v39 }
 0x103   : > { %v388_v43 = vmax.f32 %v385_v42, 1e-10 }
 0x105   : > { %652 = vlog2.f32 %v388_v43 }
 0x10f   : > { %v653_v48 = vpop.eup %652 }
 0x110   : > { %v390_v49 = vmul.f32 0.6931472, %v653_v48 }
 0x112   : > { %v391_v50 = vmul.f32 4.3429446, %v390_v49 }
 0x114   : > { %v398_v51 = vsel %vm397_vm0, %v391_v50, -inf  ;;  %410 = vst [vmem:[%s175_s28] sm:$0xff] %v391_v50 }
 0x115   : > { %399 = vmax.xlane.f32.xlu0 %v398_v51 }
 0x1a2   : > { %v400_v52 = vpop.xlane.xlu0 %399 }
 0x1a3   : > { %v401_v53 = vrot.slane %v400_v52, 4 }
 0x1a5   : > { %v402_v54 = vmax.f32 %v400_v52, %v401_v53 }
 0x1a7   : > { %v403_v55 = vrot.slane %v402_v54, 2 }
 0x1a9   : > { %v404_v56 = vmax.f32 %v402_v54, %v403_v55 }
 0x1ab   : > { %v405_v57 = vrot.slane %v404_v56, 1 }
 0x1ad   : > { %v406_v58 = vmax.f32 %v404_v56, %v405_v57 }
 0x1af   : > { %642 = vpush %v406_v58 }
 0x1e0   : > { %s643_s30 = spop %642 }
 0x1e1   : > { %v408_v59 = vstv %s643_s30 }
 0x1e2   : > { %409 = vst [vmem:[%s179_s29] sm:$0xff] %v408_v59 }
 0x1e3 PF: > { %s14_s12 = sadd.s32 1, %s660_s12  }
 0x1e4   : > { %p11_p4 = scmp.ge.s32.totalorder %s14_s12, 6  }
 0x1e6   :  { %13 = sbr.rel (!%p11_p4) target bundleno = 1 (0x1), region = 70 }

</bundles_post_ra>
